<compile_context>
chip_gen: v5e
topology: v5e:2x2
jax: 0.10.0
libtpu: 0.0.40
codegen_flags: <defaults>
</compile_context>

<pallas_src>
import functools

import jax
import jax.numpy as jnp
from jax.experimental import pallas as pl
from jax.experimental.pallas import tpu as pltpu

LANE = 128
SUBLANE = 8


def _round_up(n, m):
    return ((n + m - 1) // m) * m


@functools.lru_cache(maxsize=None)
def _vmem_capacity_bytes():
    try:
        return int(pltpu.get_tpu_info().vmem_capacity_bytes)
    except Exception:
        return 64 * 1024 * 1024  # conservative default (v7x per-TC VMEM)


def _plan(B, R, Di, Dq, H):
    """Choose region padding, batch block, grid steps, weight buffering, VMEM limit."""
    Rp = _round_up(R, SUBLANE)
    vmem_cap = _vmem_capacity_bytes()

    # Grid-invariant (resident) weight/bias bytes per pipeline buffer:
    # bf16 projection weights + f32 attention row + f32 packed biases.
    w_bytes = 2 * (Di * H + Dq * H + H * H) + 4 * (H + 3 * H)
    # Their block index never changes, so double-buffering them only doubles
    # resident VMEM; single-buffer them when they are big enough to matter.
    weight_buffers = 1 if w_bytes > (1 << 20) else 2
    resident = w_bytes * weight_buffers

    # Per-batch-element, per-grid-step bytes.
    io_per_b = 2 * (Rp * Di * 2      # x tile (bf16), double buffered
                    + Dq * 2         # q tile (bf16)
                    + H * 4          # out tile (f32)
                    + Rp * 4)        # attn tile (f32)
    live_per_b = 4 * (2 * Rp * H + 2 * H + 2 * Rp)   # f32 body intermediates
    per_b = io_per_b + live_per_b

    # Per-step working-set cap: v5e/v6e have 128 MiB VMEM, v7x only 64 MiB.
    step_cap = (16 << 20) if vmem_cap > (96 << 20) else (8 << 20)
    budget = min(step_cap, max(1 << 20, (vmem_cap * 3) // 5 - resident))

    bblk = max(1, budget // per_b)
    if bblk >= B:
        if B >= 16:
            # Split into >= 2 steps so the "parallel" batch axis can shard
            # across both TensorCores on v7x (negligible cost elsewhere).
            bblk = max(SUBLANE, (pl.cdiv(B, 2) // SUBLANE) * SUBLANE)
        else:
            bblk = B
    else:
        bblk = max(SUBLANE, (bblk // SUBLANE) * SUBLANE)
        if bblk >= B:
            bblk = B
    Bp = _round_up(B, bblk)

    needed = resident + bblk * per_b + (4 << 20)          # + compiler scratch headroom
    vmem_limit = int(min(max(needed, 32 << 20), (vmem_cap * 95) // 100))
    return Rp, bblk, Bp, weight_buffers, vmem_limit


def attention_kernel(
    x_ref,        # (Bblk*Rp, Di)  bf16 flattened image features for this block
    q_ref,        # (Bblk, Dq)     bf16 question features for this block
    w_img_ref,    # (Di, H)        bf16
    w_q_ref,      # (Dq, H)        bf16
    w_attn_ref,   # (1, H)         f32 attention weight as a lane-dense row
    w_out_ref,    # (H, H)         bf16
    bias_ref,     # (3, H)         f32 rows: b_img, b_q, b_out
    out_ref,      # (Bblk, H)      f32
    attn_ref,     # (Bblk, Rp)     f32 lane-dense attention weights
    *,
    rp,           # padded region count (static, multiple of 8)
    r_valid,      # true region count (static)
):
    bblk = q_ref.shape[0]
    h = w_img_ref.shape[1]

    b_img = bias_ref[0:1, :]
    b_q = bias_ref[1:2, :]
    b_out = bias_ref[2:3, :]

    # ---- image projection: one big bf16 MXU matmul, f32 accumulate ----
    proj_img = (
        jnp.dot(x_ref[...], w_img_ref[...], preferred_element_type=jnp.float32)
        + b_img
    )                                                        # (Bblk*Rp, H) f32

    # ---- question projection, shared across the Rp regions of each batch ----
    proj_q = (
        jnp.dot(q_ref[...], w_q_ref[...], preferred_element_type=jnp.float32)
        + b_q
    )                                                        # (Bblk, H) f32

    # rp % 8 == 0, so this reshape splits on a sublane-tile boundary.
    proj_img3 = proj_img.reshape(bblk, rp, h)                # (Bblk, Rp, H)
    combined = jnp.tanh(proj_img3 + proj_q[:, None, :])      # f32, EUP

    # ---- attention scores on the VPU: lane reduce over H (skip N=1 MXU) ----
    # b_attn is omitted: a constant shift of every score is a softmax no-op.
    w_attn = w_attn_ref[...].reshape(1, 1, h)
    scores = jnp.sum(combined * w_attn, axis=-1)             # (Bblk, Rp) f32

    if rp != r_valid:
        # Padded regions (zero image rows) must not attract attention mass.
        rid = jax.lax.broadcasted_iota(jnp.int32, (bblk, rp), 1)
        scores = jnp.where(rid < r_valid, scores, -1e30)

    # ---- softmax over the region (lane) axis, normalization on the EUP ----
    m = jnp.max(scores, axis=-1, keepdims=True)              # (Bblk, 1)
    e = jnp.exp(scores - m)                                   # (Bblk, Rp)
    denom = jnp.sum(e, axis=-1, keepdims=True)
    weights = e * pl.reciprocal(denom, approx=True)           # (Bblk, Rp)

    # ---- attended features: VPU broadcast-multiply + sublane reduce over Rp
    # (avoids Bblk tiny M=1 MXU matmuls from a batched einsum) ----
    attended = jnp.sum(weights[:, :, None] * proj_img3, axis=1)   # (Bblk, H) f32

    # ---- output projection (bf16 operands, f32 accumulate) ----
    out = (
        jnp.dot(attended.astype(w_out_ref.dtype), w_out_ref[...],
                preferred_element_type=jnp.float32)
        + b_out
    )                                                         # (Bblk, H)

    out_ref[...] = out.astype(out_ref.dtype)
    attn_ref[...] = weights.astype(attn_ref.dtype)


@jax.jit
def attention_layer(image_features, question_features, params):
    """Pallas implementation of AttentionLayer.forward.

    Args:
      image_features:    (B, R, Di) float32
      question_features: (B, Dq)    float32
      params: dict of weights stored as (in, out) plus (1, out) biases.

    Returns:
      output:            (B, H)
      attention_weights: (B, R)
    """
    B, R, Di = image_features.shape
    Dq = question_features.shape[-1]
    H = params["w_img"].shape[1]

    Rp, bblk, Bp, weight_buffers, vmem_limit = _plan(B, R, Di, Dq, H)
    num_steps = Bp // bblk

    # --- pad only what the layout requires (zeros), no Di/Dq/H padding ---
    x = image_features
    q = question_features
    if Rp != R:
        x = jnp.pad(x, ((0, 0), (0, Rp - R), (0, 0)))
    if Bp != B:
        x = jnp.pad(x, ((0, Bp - B), (0, 0), (0, 0)))
        q = jnp.pad(q, ((0, Bp - B), (0, 0)))

    # bf16 MXU operands at the boundary (matmuls still accumulate in f32).
    x2d = x.reshape(Bp * Rp, Di).astype(jnp.bfloat16)
    q = q.astype(jnp.bfloat16)
    w_img = params["w_img"].astype(jnp.bfloat16)
    w_q = params["w_q"].astype(jnp.bfloat16)
    w_out = params["w_out"].astype(jnp.bfloat16)
    # Attention weight stays f32 (used on the VPU path, not the MXU).
    w_attn = params["w_attn"].reshape(1, H).astype(jnp.float32)
    bias = jnp.concatenate(
        [params["b_img"], params["b_q"], params["b_out"]], axis=0
    ).astype(jnp.float32)                                      # (3, H)

    # Grid-invariant weights: single-buffer them when large (their block index
    # never changes, so extra buffers only burn VMEM).
    wspec = {"pipeline_mode": pl.Buffered(1)} if weight_buffers == 1 else {}

    kernel = functools.partial(attention_kernel, rp=Rp, r_valid=R)

    out, attn = pl.pallas_call(
        kernel,
        out_shape=(
            jax.ShapeDtypeStruct((Bp, H), jnp.float32),
            jax.ShapeDtypeStruct((Bp, Rp), jnp.float32),
        ),
        grid_spec=pltpu.PrefetchScalarGridSpec(
            num_scalar_prefetch=0,
            grid=(num_steps,),
            in_specs=[
                pl.BlockSpec((bblk * Rp, Di), lambda i: (i, 0)),
                pl.BlockSpec((bblk, Dq), lambda i: (i, 0)),
                pl.BlockSpec((Di, H), lambda i: (0, 0), **wspec),
                pl.BlockSpec((Dq, H), lambda i: (0, 0), **wspec),
                pl.BlockSpec((1, H), lambda i: (0, 0), **wspec),
                pl.BlockSpec((H, H), lambda i: (0, 0), **wspec),
                pl.BlockSpec((3, H), lambda i: (0, 0), **wspec),
            ],
            out_specs=[
                pl.BlockSpec((bblk, H), lambda i: (i, 0)),
                pl.BlockSpec((bblk, Rp), lambda i: (i, 0)),
            ],
        ),
        compiler_params=pltpu.CompilerParams(
            dimension_semantics=("parallel",),
            vmem_limit_bytes=vmem_limit,
        ),
    )(x2d, q, w_img, w_q, w_attn, w_out, bias)

    return out[:B, :], attn[:B, :R]


def init_params(key, image_dim, question_dim, hidden_dim):
    """Deterministic synthetic parameters (PyTorch-Linear-like uniform init)."""
    ks = jax.random.split(key, 8)

    def lin(kw, kb, fan_in, fan_out):
        bound = 1.0 / jnp.sqrt(fan_in)
        w = jax.random.uniform(kw, (fan_in, fan_out), jnp.float32, -bound, bound)
        b = jax.random.uniform(kb, (1, fan_out), jnp.float32, -bound, bound)
        return w, b

    w_img, b_img = lin(ks[0], ks[1], image_dim, hidden_dim)
    w_q, b_q = lin(ks[2], ks[3], question_dim, hidden_dim)
    w_attn, b_attn = lin(ks[4], ks[5], hidden_dim, 1)
    w_out, b_out = lin(ks[6], ks[7], hidden_dim, hidden_dim)
    return dict(
        w_img=w_img, b_img=b_img,
        w_q=w_q, b_q=b_q,
        w_attn=w_attn, b_attn=b_attn,
        w_out=w_out, b_out=b_out,
    )


def reference(image_features, question_features, params):
    """Pure-JAX f32 reference matching the PyTorch forward exactly."""
    proj_img = image_features @ params["w_img"] + params["b_img"]        # (B,R,H)
    proj_q = question_features @ params["w_q"] + params["b_q"]           # (B,H)
    combined = jnp.tanh(proj_img + proj_q[:, None, :])
    scores = combined @ params["w_attn"] + params["b_attn"]              # (B,R,1)
    weights = jax.nn.softmax(scores, axis=1)
    attended = jnp.sum(weights * proj_img, axis=1)                       # (B,H)
    out = attended @ params["w_out"] + params["b_out"]                   # (B,H)
    return out, weights[..., 0]


if __name__ == "__main__":
    B, R = 2, 8
    image_dim, question_dim, hidden_dim = 16, 32, 32

    key = jax.random.PRNGKey(0)
    k_img, k_q, k_params = jax.random.split(key, 3)

    image_features = jax.random.normal(k_img, (B, R, image_dim), jnp.float32)
    question_features = jax.random.normal(k_q, (B, question_dim), jnp.float32)
    params = init_params(k_params, image_dim, question_dim, hidden_dim)

    out, attn = attention_layer(image_features, question_features, params)
    jax.block_until_ready((out, attn))

    ref_out, ref_attn = reference(image_features, question_features, params)
    assert out.shape == (B, hidden_dim) and attn.shape == (B, R)
    # Tolerances reflect bf16 matmul operands (f32 accumulate) + approx
    # reciprocal in the softmax; the algorithm itself matches the f32 module.
    assert jnp.allclose(out, ref_out, atol=5e-2, rtol=5e-2), float(
        jnp.max(jnp.abs(out - ref_out)))
    assert jnp.allclose(attn, ref_attn, atol=1e-2, rtol=1e-2), float(
        jnp.max(jnp.abs(attn - ref_attn)))

    print("KERNEL_OK")
</pallas_src>

<mosaic_0001>
module attributes {stable_mosaic.version = 11 : i64} {
  func.func @attention_kernel(%arg0: i32, %arg1: memref<16x16xbf16, #tpu.memory_space<vmem>>, %arg2: memref<2x32xbf16, #tpu.memory_space<vmem>>, %arg3: memref<16x32xbf16, #tpu.memory_space<vmem>>, %arg4: memref<32x32xbf16, #tpu.memory_space<vmem>>, %arg5: memref<1x32xf32, #tpu.memory_space<vmem>>, %arg6: memref<32x32xbf16, #tpu.memory_space<vmem>>, %arg7: memref<3x32xf32, #tpu.memory_space<vmem>>, %arg8: memref<2x32xf32, #tpu.memory_space<vmem>>, %arg9: memref<2x8xf32, #tpu.memory_space<vmem>>) attributes {dimension_semantics = [#tpu.dimension_semantics<parallel>], iteration_bounds = array<i64: 1>, scalar_prefetch = 0 : i64, scratch_operands = 0 : i64, tpu.core_type = #tpu.core_type<tc>, window_params = [{transform_indices = @transform_0, window_bounds = array<i64: 16, 16>}, {transform_indices = @transform_1, window_bounds = array<i64: 2, 32>}, {pipeline_mode = #tpu.pipeline_mode<synchronous>, transform_indices = @transform_2, window_bounds = array<i64: 16, 32>}, {pipeline_mode = #tpu.pipeline_mode<synchronous>, transform_indices = @transform_3, window_bounds = array<i64: 32, 32>}, {pipeline_mode = #tpu.pipeline_mode<synchronous>, transform_indices = @transform_4, window_bounds = array<i64: 1, 32>}, {pipeline_mode = #tpu.pipeline_mode<synchronous>, transform_indices = @transform_5, window_bounds = array<i64: 32, 32>}, {pipeline_mode = #tpu.pipeline_mode<synchronous>, transform_indices = @transform_6, window_bounds = array<i64: 3, 32>}, {transform_indices = @transform_7, window_bounds = array<i64: 2, 32>}, {transform_indices = @transform_8, window_bounds = array<i64: 2, 8>}]} {
    %c0 = arith.constant 0 : index
    %c0_0 = arith.constant 0 : index
    %0 = vector.load %arg7[%c0, %c0_0] : memref<3x32xf32, #tpu.memory_space<vmem>>, vector<1x32xf32>
    %c1 = arith.constant 1 : index
    %c0_1 = arith.constant 0 : index
    %1 = vector.load %arg7[%c1, %c0_1] : memref<3x32xf32, #tpu.memory_space<vmem>>, vector<1x32xf32>
    %c2 = arith.constant 2 : index
    %c0_2 = arith.constant 0 : index
    %2 = vector.load %arg7[%c2, %c0_2] : memref<3x32xf32, #tpu.memory_space<vmem>>, vector<1x32xf32>
    %c0_3 = arith.constant 0 : index
    %c0_4 = arith.constant 0 : index
    %3 = vector.load %arg1[%c0_3, %c0_4] : memref<16x16xbf16, #tpu.memory_space<vmem>>, vector<16x16xbf16>
    %c0_5 = arith.constant 0 : index
    %c0_6 = arith.constant 0 : index
    %4 = vector.load %arg3[%c0_5, %c0_6] : memref<16x32xbf16, #tpu.memory_space<vmem>>, vector<16x32xbf16>
    %cst = arith.constant dense<0.000000e+00> : vector<16x32xf32>
    %5 = tpu.matmul %3, %4, %cst {dimension_numbers = #tpu.dot_dimension_numbers<[1], [0], [0], [1], [0, 0, 1, 1], [], []>} : vector<16x16xbf16>, vector<16x32xbf16>, vector<16x32xf32> -> vector<16x32xf32>
    %6 = vector.broadcast %0 : vector<1x32xf32> to vector<16x32xf32>
    %7 = arith.addf %5, %6 : vector<16x32xf32>
    %c0_7 = arith.constant 0 : index
    %c0_8 = arith.constant 0 : index
    %8 = vector.load %arg2[%c0_7, %c0_8] : memref<2x32xbf16, #tpu.memory_space<vmem>>, vector<2x32xbf16>
    %c0_9 = arith.constant 0 : index
    %c0_10 = arith.constant 0 : index
    %9 = vector.load %arg4[%c0_9, %c0_10] : memref<32x32xbf16, #tpu.memory_space<vmem>>, vector<32x32xbf16>
    %cst_11 = arith.constant dense<0.000000e+00> : vector<2x32xf32>
    %10 = tpu.matmul %8, %9, %cst_11 {dimension_numbers = #tpu.dot_dimension_numbers<[1], [0], [0], [1], [0, 0, 1, 1], [], []>} : vector<2x32xbf16>, vector<32x32xbf16>, vector<2x32xf32> -> vector<2x32xf32>
    %11 = vector.broadcast %1 : vector<1x32xf32> to vector<2x32xf32>
    %12 = arith.addf %10, %11 : vector<2x32xf32>
    %13 = vector.shape_cast %7 : vector<16x32xf32> to vector<2x8x32xf32>
    %14 = vector.shape_cast %12 : vector<2x32xf32> to vector<2x1x32xf32>
    %15 = vector.broadcast %14 : vector<2x1x32xf32> to vector<2x8x32xf32>
    %16 = arith.addf %13, %15 : vector<2x8x32xf32>
    %17 = math.tanh %16 : vector<2x8x32xf32>
    %c0_12 = arith.constant 0 : index
    %c0_13 = arith.constant 0 : index
    %18 = vector.load %arg5[%c0_12, %c0_13] : memref<1x32xf32, #tpu.memory_space<vmem>>, vector<1x32xf32>
    %19 = vector.shape_cast %18 : vector<1x32xf32> to vector<1x1x32xf32>
    %20 = vector.broadcast %19 : vector<1x1x32xf32> to vector<2x8x32xf32>
    %21 = arith.mulf %17, %20 : vector<2x8x32xf32>
    %cst_14 = arith.constant dense<0.000000e+00> : vector<2x8xf32>
    %22 = vector.multi_reduction <add>, %21, %cst_14 [2] : vector<2x8x32xf32> to vector<2x8xf32>
    %cst_15 = arith.constant dense<0xFF800000> : vector<2xf32>
    %23 = vector.multi_reduction <maximumf>, %22, %cst_15 [1] : vector<2x8xf32> to vector<2xf32>
    %24 = vector.shape_cast %23 : vector<2xf32> to vector<2x1xf32>
    %25 = vector.broadcast %24 : vector<2x1xf32> to vector<2x8xf32>
    %26 = arith.subf %22, %25 : vector<2x8xf32>
    %27 = math.exp %26 : vector<2x8xf32>
    %cst_16 = arith.constant dense<0.000000e+00> : vector<2xf32>
    %28 = vector.multi_reduction <add>, %27, %cst_16 [1] : vector<2x8xf32> to vector<2xf32>
    %29 = vector.shape_cast %28 : vector<2xf32> to vector<2x1xf32>
    %30 = tpu.reciprocal %29 {approx = true} : vector<2x1xf32> -> vector<2x1xf32>
    %31 = vector.broadcast %30 : vector<2x1xf32> to vector<2x8xf32>
    %32 = arith.mulf %27, %31 : vector<2x8xf32>
    %33 = vector.shape_cast %32 : vector<2x8xf32> to vector<2x8x1xf32>
    %34 = vector.broadcast %33 : vector<2x8x1xf32> to vector<2x8x32xf32>
    %35 = arith.mulf %34, %13 : vector<2x8x32xf32>
    %cst_17 = arith.constant dense<0.000000e+00> : vector<2x32xf32>
    %36 = vector.multi_reduction <add>, %35, %cst_17 [1] : vector<2x8x32xf32> to vector<2x32xf32>
    %37 = arith.truncf %36 : vector<2x32xf32> to vector<2x32xbf16>
    %c0_18 = arith.constant 0 : index
    %c0_19 = arith.constant 0 : index
    %38 = vector.load %arg6[%c0_18, %c0_19] : memref<32x32xbf16, #tpu.memory_space<vmem>>, vector<32x32xbf16>
    %cst_20 = arith.constant dense<0.000000e+00> : vector<2x32xf32>
    %39 = tpu.matmul %37, %38, %cst_20 {dimension_numbers = #tpu.dot_dimension_numbers<[1], [0], [0], [1], [0, 0, 1, 1], [], []>} : vector<2x32xbf16>, vector<32x32xbf16>, vector<2x32xf32> -> vector<2x32xf32>
    %40 = vector.broadcast %2 : vector<1x32xf32> to vector<2x32xf32>
    %41 = arith.addf %39, %40 : vector<2x32xf32>
    %c0_21 = arith.constant 0 : index
    %c0_22 = arith.constant 0 : index
    %42 = vector.load %arg8[%c0_21, %c0_22] : memref<2x32xf32, #tpu.memory_space<vmem>>, vector<2x32xf32>
    tpu.vector_store %arg8[%c0_21, %c0_22], %41 {strides = array<i32>} : memref<2x32xf32, #tpu.memory_space<vmem>>, vector<2x32xf32>,
    %c0_23 = arith.constant 0 : index
    %c0_24 = arith.constant 0 : index
    %43 = vector.load %arg9[%c0_23, %c0_24] : memref<2x8xf32, #tpu.memory_space<vmem>>, vector<2x8xf32>
    tpu.vector_store %arg9[%c0_23, %c0_24], %32 {strides = array<i32>} : memref<2x8xf32, #tpu.memory_space<vmem>>, vector<2x8xf32>,
    return
  }
  func.func @transform_0(%arg0: i32) -> (i32, i32) {
    %c0_i32 = arith.constant 0 : i32
    %c0_i32_0 = arith.constant 0 : i32
    return %arg0, %c0_i32 : i32, i32
  }
  func.func @transform_1(%arg0: i32) -> (i32, i32) {
    %c0_i32 = arith.constant 0 : i32
    %c0_i32_0 = arith.constant 0 : i32
    return %arg0, %c0_i32 : i32, i32
  }
  func.func @transform_2(%arg0: i32) -> (i32, i32) {
    %c0_i32 = arith.constant 0 : i32
    %c0_i32_0 = arith.constant 0 : i32
    %c0_i32_1 = arith.constant 0 : i32
    return %c0_i32, %c0_i32_0 : i32, i32
  }
  func.func @transform_3(%arg0: i32) -> (i32, i32) {
    %c0_i32 = arith.constant 0 : i32
    %c0_i32_0 = arith.constant 0 : i32
    %c0_i32_1 = arith.constant 0 : i32
    return %c0_i32, %c0_i32_0 : i32, i32
  }
  func.func @transform_4(%arg0: i32) -> (i32, i32) {
    %c0_i32 = arith.constant 0 : i32
    %c0_i32_0 = arith.constant 0 : i32
    %c0_i32_1 = arith.constant 0 : i32
    return %c0_i32, %c0_i32_0 : i32, i32
  }
  func.func @transform_5(%arg0: i32) -> (i32, i32) {
    %c0_i32 = arith.constant 0 : i32
    %c0_i32_0 = arith.constant 0 : i32
    %c0_i32_1 = arith.constant 0 : i32
    return %c0_i32, %c0_i32_0 : i32, i32
  }
  func.func @transform_6(%arg0: i32) -> (i32, i32) {
    %c0_i32 = arith.constant 0 : i32
    %c0_i32_0 = arith.constant 0 : i32
    %c0_i32_1 = arith.constant 0 : i32
    return %c0_i32, %c0_i32_0 : i32, i32
  }
  func.func @transform_7(%arg0: i32) -> (i32, i32) {
    %c0_i32 = arith.constant 0 : i32
    %c0_i32_0 = arith.constant 0 : i32
    return %arg0, %c0_i32 : i32, i32
  }
  func.func @transform_8(%arg0: i32) -> (i32, i32) {
    %c0_i32 = arith.constant 0 : i32
    %c0_i32_0 = arith.constant 0 : i32
    return %arg0, %c0_i32 : i32, i32
  }
}

</mosaic_0001>

<bundles_post_ra>
// kernel: attention_layer.1
= control target key start
LH: loop header
LB: loop body
LE: loop exit
PB: predicated region body
PF: predicated region fallthrough
CT: control target
= control target key end

     0   :  { %14 = vsyncpa [#allocation3], 0  ;;  %vm50_vm0 = vcmask 130048   ;;  %s491_s0 = inlined_call_operand.vmem [shape: bf16[16,16], index: 0, kind: input, shape index: {}]   ;;  %s492_s1 = inlined_call_operand.vmem [shape: bf16[2,32], index: 1, kind: input, shape index: {}]   ;;  %s493_s2 = inlined_call_operand.vmem [shape: bf16[16,32], index: 2, kind: input, shape index: {}]   ;;  %s494_s3 = inlined_call_operand.vmem [shape: bf16[32,32], index: 3, kind: input, shape index: {}]   ;;  %s495_s4 = inlined_call_operand.vmem [shape: f32[1,32], index: 4, kind: input, shape index: {}]   ;;  %s496_s5 = inlined_call_operand.vmem [shape: bf16[32,32], index: 5, kind: input, shape index: {}]   ;;  %s497_s6 = inlined_call_operand.vmem [shape: f32[3,32], index: 6, kind: input, shape index: {}]   ;;  %s498_s7 = inlined_call_operand.hbm [shape: f32[2,32], index: 7, kind: output, shape index: {0}]   ;;  %s499_s8 = inlined_call_operand.hbm [shape: f32[2,8], index: 8, kind: output, shape index: {1}]  }
   0x1   :  { %v306_v0 = vld [vmem:[%s493_s2] sm:$0xff]  ;;  %v308_v1 = vld [vmem:[%s494_s3 + $0x8] sm:$0xff] }
   0x2   :  { %v305_v2 = vld [vmem:[%s491_s0] sm:$0xff]  ;;  %61 = vmatpush.bf16.msra.mxu0 %v306_v0  ;;  %96 = vmatpush.bf16.msra.mxu1 %v308_v1 }
   0x3   :  { %v307_v3 = vld [vmem:[%s494_s3] sm:$0xff] }
   0x4   :  { %15 = vsyncpa [#allocation5], 0  ;;  %v68_v4 = vld [vmem:[%s492_s1] sm:$0x1]  ;;  %vm86_vm1 = vcmask 261120   ;;  %v127_v27 = vlaneseq  ;;  %vm131_vm2 = vcmask 1041409  }
   0x5   :  { %286 = vmatmul.msk.bf16.vlgmr.msra.gmra.mxu0 %vm50_vm0, %v305_v2  ;;  %v317_v6 = vld [vmem:[%s497_s6] ss:$0 sm:$0xff]  ;;  %v318_v7 = vld [vmem:[%s497_s6 + $0x1] ss:$0 sm:$0xff]  ;;  %vm134_vm3 = vcmask 58368   ;;  %v383_v34 = vmov 0  }
   0x6   :  { %97 = vmatpush.bf16.msra.mxu1 %v307_v3  ;;  %v319_v19 = vld [vmem:[%s495_s4] ss:$0 sm:$0xff]  ;;  %v128_v28 = vand.u32 127, %v127_v27  ;;  %315 = vset.pattern.permute.xlu2 %v383_v34  ;;  %v310_v56 = vld [vmem:[%s496_s5 + $0x8] sm:$0xff]  ;;  %s264_s23 = sshll.u32 %s499_s8, 4  ;;  %s385_s26 = smov [#allocation2]   ;;  %s265_s23 = int_to_ptr.hbm [resolvable:$true] %s264_s23 }
   0x7   :  { %314 = vset.pattern.permute.xlu1 %v383_v34  ;;  %316 = vset.pattern.permute.xlu0 %v383_v34  ;;  %v309_v57 = vld [vmem:[%s496_s5] sm:$0xff]  ;;  %s384_s5 = smov [#allocation4]   ;;  %s251_s27 = sshll.u32 %s385_s26, 4  ;;  %vm239_vm4 = vcmask 254976   ;;  %s252_s27 = int_to_ptr.vmem [resolvable:$true] %s251_s27 }
   0x8   :  { %232 = vmatpush.bf16.msra.mxu2 %v310_v56  ;;  %s262_s20 = sshll.u32 %s384_s5, 4  ;;  %s253_s30 = sshll.u32 %s498_s7, 4  ;;  %s263_s20 = int_to_ptr.vmem [resolvable:$true] %s262_s20  ;;  %s254_s30 = int_to_ptr.hbm [resolvable:$true] %s253_s30 }
   0x9   :  { %295 = vmatmul.msk.bf16.vlgmr.msra.gmra.mxu1 %vm86_vm1, %v68_v4 }
   0xc   :  { %233 = vmatpush.bf16.msra.mxu2 %v309_v57 }
  0x82   :  { %v63_v5 = vpop.f32.mrf.mxu0 }
  0x83   :  { %v453_v9 = vadd.f32 %v317_v6, %v63_v5 }
  0x86   :  { %v99_v8 = vpop.f32.mrf.mxu1 }
  0x87   :  { %v100_v10 = vadd.f32 %v318_v7, %v99_v8 }
  0x89   :  { %v104_v11 = vrot.slane %v100_v10, 1  ;;  %v105_v12 = vperm.slane %v100_v10, 0 }
  0x8a   :  { %v65_v13 = vpop.f32.mrf.mxu0 }
  0x8b   :  { %v106_v14 = vperm.slane %v104_v11, 0  ;;  %v109_v15 = vadd.f32 %v105_v12, %v453_v9  ;;  %v456_v16 = vadd.f32 %v317_v6, %v65_v13 }
  0x8d   :  { %321 = vtanh.f32 %v109_v15  ;;  %v110_v17 = vadd.f32 %v106_v14, %v456_v16 }
  0x8e   :  { %v101_v18 = vpop.f32.mrf.mxu1 }
  0x8f   :  { %323 = vtanh.f32 %v110_v17 }
  0x93   :  { %v322_v20 = vpop.eup %321 }
  0x94   :  { %v117_v21 = vmul.f32 %v322_v20, %v319_v19 }
  0x95   :  { %v324_v23 = vpop.eup %323 }
  0x96   :  { %v119_v22 = vsel %vm86_vm1, %v117_v21, 0.0  ;;  %v118_v24 = vmul.f32 %v324_v23, %v319_v19  ;;  %v320_v21 = vld [vmem:[%s497_s6 + $0x2] ss:$0 sm:$0xff] }
  0x97   :  { %120 = vadd.xlane.f32.xlu0 %v119_v22 }
  0x98   :  { %v122_v25 = vsel %vm86_vm1, %v118_v24, 0.0 }
  0x9f   :  { %123 = vadd.xlane.f32.xlu0 %v122_v25 }
 0x10a   :  { %v121_v26 = vpop.xlane.xlu0 %120 }
 0x10b   :  { %v129_v30 = vperm.slane %v121_v26, %v128_v28 }
 0x112   :  { %v124_v29 = vpop.xlane.xlu0 %123 }
 0x113   :  { %v130_v31 = vperm.slane %v124_v29, %v128_v28 }
 0x115   :  { %v132_v32 = vsel %vm131_vm2, %v130_v31, %v129_v30 }
 0x116   :  { %v135_v33 = vsel %vm134_vm3, %v132_v32, -inf }
 0x117   :  { %136 = vmax.xlane.f32.xlu1 %v135_v33 }
 0x18a   :  { %v137_v35 = vpop.xlane.xlu1 %136 }
 0x18b   :  { %v139_v36 = vperm.slane %v137_v35, 0  ;;  %v140_v37 = vperm.slane %v137_v35, 1 }
 0x18d   :  { %v143_v38 = vsub.f32 %v121_v26, %v139_v36  ;;  %v144_v39 = vsub.f32 %v124_v29, %v140_v37 }
 0x18f   :  { %v145_v40 = vmul.f32 1.442695, %v143_v38  ;;  %v147_v41 = vmul.f32 1.442695, %v144_v39 }
 0x191   :  { %325 = vpow2.f32 %v145_v40 }
 0x192   :  { %327 = vpow2.f32 %v147_v41 }
 0x197   :  { %v326_v42 = vpop.eup %325 }
 0x198   :  { %v328_v43 = vpop.eup %327  ;;  %152 = vperm.xlu1 %314, %v326_v42  }
 0x199   :  { %155 = vperm.xlu2 %315, %v328_v43  }
 0x1f3   :  { %v156_v44 = vpop.permute.xlu2 %155 }
 0x1f4   :  { %v158_v46 = vperm.slane %v156_v44, %v128_v28 }
 0x20a   :  { %v153_v45 = vpop.permute.xlu1 %152 }
 0x20b   :  { %v157_v47 = vperm.slane %v153_v45, %v128_v28 }
 0x20d   :  { %v159_v48 = vsel %vm131_vm2, %v158_v46, %v157_v47 }
 0x20e   :  { %v161_v49 = vsel %vm134_vm3, %v159_v48, 0.0 }
 0x20f   :  { %162 = vadd.xlane.f32.xlu2 %v161_v49 }
 0x282   :  { %v163_v50 = vpop.xlane.xlu2 %162 }
 0x283   :  { %329 = vrcp.f32 %v163_v50 }
 0x289   :  { %v330_v51 = vpop.eup %329 }
 0x28a   :  { %v167_v52 = vperm.slane %v330_v51, 1  ;;  %v166_v53 = vperm.slane %v330_v51, 0 }
 0x28c   :  { %v171_v54 = vmul.f32 %v328_v43, %v167_v52  ;;  %v170_v55 = vmul.f32 %v326_v42, %v166_v53 }
 0x28e   :  { %179 = vperm.xlu1 %314, %v171_v54   ;;  %174 = vperm.xlu0 %316, %v170_v55  }
 0x300   :  { %v180_v58 = vpop.permute.xlu1 %179  ;;  %v175_v59 = vpop.permute.xlu0 %174 }
 0x301   :  { %v183_v60 = vmul.f32 %v180_v58, %v456_v16  ;;  %v242_v61 = vperm.slane %v180_v58, %v128_v28  ;;  %v182_v62 = vmul.f32 %v175_v59, %v453_v9  ;;  %v241_v63 = vperm.slane %v175_v59, %v128_v28 }
 0x303   :  { %v191_v0 = vsel %vm86_vm1, %v183_v60, 0.0  ;;  %v184_v1 = vsel %vm86_vm1, %v182_v62, 0.0  ;;  %v243_v2 = vsel %vm131_vm2, %v242_v61, %v241_v63 }
 0x304   :  { %v192_v3 = vrot.slane %v191_v0, 4  ;;  %v185_v4 = vrot.slane %v184_v1, 4  ;;  %245 = vst.msk [vmem:[#allocation4] sm:$0x3] %vm134_vm3, %v243_v2 }
 0x305   :  { %267 = dma.vmem_to_hbm [thread:$0]  %s263_s20, 32, %s265_s23, [#allocation5]  }
 0x306   :  { %v193_v5 = vadd.f32 %v192_v3, %v191_v0  ;;  %v186_v6 = vadd.f32 %v185_v4, %v184_v1 }
 0x308   :  { %v194_v7 = vrot.slane %v193_v5, 2  ;;  %v187_v8 = vrot.slane %v186_v6, 2 }
 0x30a   :  { %v195_v10 = vadd.f32 %v194_v7, %v193_v5  ;;  %v188_v11 = vadd.f32 %v187_v8, %v186_v6 }
 0x30c   :  { %v196_v12 = vrot.slane %v195_v10, 1  ;;  %v189_v13 = vrot.slane %v188_v11, 1 }
 0x30e   :  { %v197_v9 = vadd.f32 %v196_v12, %v195_v10  ;;  %v190_v14 = vadd.f32 %v189_v13, %v188_v11 }
 0x310   :  { %v199_v15 = vpack.c.bf16 %v197_v9, %v197_v9  ;;  %v198_v16 = vpack.c.bf16 %v190_v14, %v190_v14 }
 0x312   :  { %v208_v17 = vunpack.c.l.b16 %v199_v15  ;;  %v207_v18 = vunpack.c.l.b16 %v198_v16 }
 0x314   :  { %v209_v19 = vsel %vm131_vm2, %v208_v17, %v207_v18 }
 0x315   :  { %v210_v20 = vpack.c.b16 %v209_v19, %v209_v19 }
 0x317   :  { %304 = vmatmul.msk.bf16.vlgmr.msra.gmra.mxu2 %vm86_vm1, %v210_v20 }
 0x39a   :  { %v235_v22 = vpop.f32.mrf.mxu2 }
 0x39b   :  { %v236_v23 = vadd.f32 %v320_v21, %v235_v22 }
 0x39d   :  { %240 = vst.msk [vmem:[#allocation2] sm:$0x3] %vm239_vm4, %v236_v23 }
 0x39e   :  { %256 = dma.vmem_to_hbm [thread:$0]  %s252_s27, 32, %s254_s30, [#allocation3]  }
 0x3a2   :  { %v237_v24 = vpop.f32.mrf.mxu2 }
 0x3a3   :  { %379 = dma.done.wait [#allocation3], 32  }
 0x3a4   :  { %380 = vsyncadd [#allocation3], 4294967264 }
 0x3a5   :  { %381 = dma.done.wait [#allocation5], 32  }
 0x3a6   :  { %382 = vsyncadd [#allocation5], 4294967264 }
 0x3a7   :  { %276 = vsyncpa [#allocation3], 1 }
 0x3a8   :  { %277 = vsyncpa [#allocation5], 1 }

</bundles_post_ra>
